<compile_context>
chip_gen: v5e
topology: v5e:2x2
jax: 0.10.0
libtpu: 0.0.40
codegen_flags: <defaults>
</compile_context>

<pallas_src>
import functools

import numpy as np

import jax
import jax.numpy as jnp
from jax.experimental import pallas as pl
from jax.experimental.pallas import tpu as pltpu


def _round_up(x, m):
    return ((x + m - 1) // m) * m


def _cdiv(a, b):
    return (a + b - 1) // b


def _choose_tile(batch, tile_b, min_steps=2):
    """Pick (tile, grid) so padding is < 8 rows/step and >=2 steps when possible."""
    b8 = _round_up(batch, 8)
    tile_cap = max(8, min(tile_b, b8))
    n_steps = _cdiv(b8, tile_cap)
    if b8 >= 16:                       # enough work to split across 2 TCs (v7x)
        n_steps = max(n_steps, min_steps)
    tile = _round_up(_cdiv(batch, n_steps), 8)
    grid_b = _cdiv(batch, tile)
    return tile, grid_b


def params_kernel(obs_ref, act_ref,
                  w1o_ref, w1a_ref, b1_ref,
                  w2_ref, b2_ref,
                  wloc_ref, bloc_ref,
                  wsc_ref, bsc_ref,
                  loc_ref, scale_ref):
    """One batch tile of the params MLP: 2 hidden layers + loc/scale heads."""
    wdt = w1o_ref.dtype                      # matmul operand dtype (f32 or bf16)

    obs = obs_ref[...].astype(wdt)
    act = act_ref[...].astype(wdt)

    # Layer 1: split-weight form of concat(obs, action) @ W1 (f32 accumulation).
    h1 = (jnp.dot(obs, w1o_ref[...], preferred_element_type=jnp.float32)
          + jnp.dot(act, w1a_ref[...], preferred_element_type=jnp.float32)
          + b1_ref[...])
    h1 = jnp.maximum(h1, 0.0)

    # Layer 2.
    h2 = jnp.dot(h1.astype(wdt), w2_ref[...],
                 preferred_element_type=jnp.float32) + b2_ref[...]
    h2 = jnp.maximum(h2, 0.0).astype(wdt)

    # Heads: separate matmuls keep both outputs lane-exact (no in-kernel split).
    loc = jnp.dot(h2, wloc_ref[...],
                  preferred_element_type=jnp.float32) + bloc_ref[...]
    pre = jnp.dot(h2, wsc_ref[...],
                  preferred_element_type=jnp.float32) + bsc_ref[...]

    # Numerically stable softplus: max(x,0) + log1p(exp(-|x|))  (exp/log1p -> EUP).
    scale = jnp.maximum(pre, 0.0) + jnp.log1p(jnp.exp(-jnp.abs(pre)))

    loc_ref[...] = loc.astype(loc_ref.dtype)
    scale_ref[...] = scale.astype(scale_ref.dtype)


def prepare_params(params, obs_dim, act_dim, *,
                   matmul_dtype=jnp.float32, mxu_width=128):
    """One-time weight prep: split w1, zero-pad hidden width to the MXU width.

    mxu_width: use 256 on v6e/v7x when the *real* hidden width is >= 128;
    small hiddens stay padded to 128 (don't inflate 32 -> 256).
    """
    h = params["w1"].shape[1]
    pad_to = mxu_width if h >= 128 else 128
    h_pad = _round_up(h, pad_to)
    out_dim = params["w_loc"].shape[1]

    def pad2(w, rows, cols):
        return jnp.pad(w, ((0, rows - w.shape[0]), (0, cols - w.shape[1])))

    return {
        "w1_obs": pad2(params["w1"][:obs_dim], obs_dim, h_pad).astype(matmul_dtype),
        "w1_act": pad2(params["w1"][obs_dim:], act_dim, h_pad).astype(matmul_dtype),
        "b1": pad2(params["b1"], 1, h_pad).astype(jnp.float32),
        "w2": pad2(params["w2"], h_pad, h_pad).astype(matmul_dtype),
        "b2": pad2(params["b2"], 1, h_pad).astype(jnp.float32),
        "w_loc": pad2(params["w_loc"], h_pad, out_dim).astype(matmul_dtype),
        "b_loc": params["b_loc"].astype(jnp.float32),
        "w_scale": pad2(params["w_scale"], h_pad, out_dim).astype(matmul_dtype),
        "b_scale": params["b_scale"].astype(jnp.float32),
    }


@functools.partial(jax.jit, static_argnames=("tile_b", "out_dtype"))
def stochastic_model_forward(obs, action, prepared, *,
                             tile_b=512, out_dtype=jnp.float32):
    """Pallas-backed equivalent of StochasticModel.forward(obs, action)."""
    B, obs_dim = obs.shape
    act_dim = action.shape[1]
    h_pad = prepared["w1_obs"].shape[1]
    out_dim = prepared["w_loc"].shape[1]

    tile, grid_b = _choose_tile(B, tile_b)
    b_pad = grid_b * tile
    if b_pad != B:
        obs = jnp.pad(obs, ((0, b_pad - B), (0, 0)))
        action = jnp.pad(action, ((0, b_pad - B), (0, 0)))

    def batch_tiled(shape):
        return pl.BlockSpec(shape, lambda i: (i, 0))

    def replicated(shape):
        # Grid-invariant block: DMA'd once.  (For production hidden sizes,
        # pipeline_mode=pl.Buffered(1) would drop the second VMEM copy.)
        return pl.BlockSpec(shape, lambda i: (0, 0))

    w_bytes = sum(int(v.size) * v.dtype.itemsize for v in prepared.values())
    out_itemsize = np.dtype(out_dtype).itemsize
    cost = pl.CostEstimate(
        flops=2 * b_pad * (obs_dim * h_pad + act_dim * h_pad
                           + h_pad * h_pad + 2 * h_pad * out_dim),
        transcendentals=2 * b_pad * out_dim,                 # exp + log1p (scale)
        bytes_accessed=(b_pad * obs_dim * obs.dtype.itemsize
                        + b_pad * act_dim * action.dtype.itemsize
                        + w_bytes
                        + 2 * b_pad * out_dim * out_itemsize),
    )

    loc_full, scale_full = pl.pallas_call(
        params_kernel,
        out_shape=(jax.ShapeDtypeStruct((b_pad, out_dim), out_dtype),
                   jax.ShapeDtypeStruct((b_pad, out_dim), out_dtype)),
        grid=(grid_b,),
        in_specs=[
            batch_tiled((tile, obs_dim)),          # obs
            batch_tiled((tile, act_dim)),          # action
            replicated((obs_dim, h_pad)),          # w1_obs
            replicated((act_dim, h_pad)),          # w1_act
            replicated((1, h_pad)),                # b1
            replicated((h_pad, h_pad)),            # w2
            replicated((1, h_pad)),                # b2
            replicated((h_pad, out_dim)),          # w_loc
            replicated((1, out_dim)),              # b_loc
            replicated((h_pad, out_dim)),          # w_scale
            replicated((1, out_dim)),              # b_scale
        ],
        out_specs=(batch_tiled((tile, out_dim)),   # loc   (exact lane width)
                   batch_tiled((tile, out_dim))),  # scale (exact lane width)
        compiler_params=pltpu.CompilerParams(
            dimension_semantics=("parallel",)),
        cost_estimate=cost,
    )(obs, action,
      prepared["w1_obs"], prepared["w1_act"], prepared["b1"],
      prepared["w2"], prepared["b2"],
      prepared["w_loc"], prepared["b_loc"],
      prepared["w_scale"], prepared["b_scale"])

    if b_pad != B:                                  # only slice when padded
        loc_full = loc_full[:B]
        scale_full = scale_full[:B]
    return {"loc": loc_full, "scale": scale_full}


def init_params(key, obs_dim, act_dim, hidden):
    """Deterministic synthetic parameter init (no checkpoint loading)."""
    in_dim = obs_dim + act_dim
    keys = jax.random.split(key, 4)

    def glorot(k, fan_in, fan_out):
        lim = (6.0 / (fan_in + fan_out)) ** 0.5
        return jax.random.uniform(k, (fan_in, fan_out), jnp.float32, -lim, lim)

    return {
        "w1": glorot(keys[0], in_dim, hidden),
        "b1": jnp.zeros((1, hidden), jnp.float32),
        "w2": glorot(keys[1], hidden, hidden),
        "b2": jnp.zeros((1, hidden), jnp.float32),
        "w_loc": glorot(keys[2], hidden, obs_dim),
        "b_loc": jnp.zeros((1, obs_dim), jnp.float32),
        "w_scale": glorot(keys[3], hidden, obs_dim),
        "b_scale": jnp.zeros((1, obs_dim), jnp.float32),
    }


def reference_forward(obs, action, params):
    """Pure-JAX reference of the same params module, for a sanity check."""
    x = jnp.concatenate([obs, action], axis=-1)
    h1 = jnp.maximum(x @ params["w1"] + params["b1"], 0.0)
    h2 = jnp.maximum(h1 @ params["w2"] + params["b2"], 0.0)
    loc = h2 @ params["w_loc"] + params["b_loc"]
    scale = jax.nn.softplus(h2 @ params["w_scale"] + params["b_scale"])
    return {"loc": loc, "scale": scale}


if __name__ == "__main__":
    key = jax.random.PRNGKey(0)
    k_obs, k_act, k_par, k_obs2, k_act2 = jax.random.split(key, 5)

    B, OBS, ACT, HID = 8, 16, 8, 32
    obs = jax.random.normal(k_obs, (B, OBS), jnp.float32)
    action = jax.random.normal(k_act, (B, ACT), jnp.float32)
    params = init_params(k_par, OBS, ACT, HID)
    ref = reference_forward(obs, action, params)

    # f32 matmul path: strict check against the f32 reference.
    prep_f32 = prepare_params(params, OBS, ACT, matmul_dtype=jnp.float32)
    out = stochastic_model_forward(obs, action, prep_f32)
    jax.block_until_ready(out)
    assert out["loc"].shape == (B, OBS) and out["scale"].shape == (B, OBS)
    assert jnp.allclose(out["loc"], ref["loc"], atol=1e-5, rtol=1e-5)
    assert jnp.allclose(out["scale"], ref["scale"], atol=1e-5, rtol=1e-5)
    assert bool(jnp.all(out["scale"] > 0.0))

    # Ragged / multi-tile batch: exercises grid=(2,) and bounded row padding.
    B2 = 36
    obs2 = jax.random.normal(k_obs2, (B2, OBS), jnp.float32)
    act2 = jax.random.normal(k_act2, (B2, ACT), jnp.float32)
    ref2 = reference_forward(obs2, act2, params)
    out2 = stochastic_model_forward(obs2, act2, prep_f32)
    jax.block_until_ready(out2)
    assert out2["loc"].shape == (B2, OBS) and out2["scale"].shape == (B2, OBS)
    assert jnp.allclose(out2["loc"], ref2["loc"], atol=1e-5, rtol=1e-5)
    assert jnp.allclose(out2["scale"], ref2["scale"], atol=1e-5, rtol=1e-5)

    # bf16 operand path (valid on v5e/v6e/v7x MXUs), f32 accumulation, bf16
    # inputs/outputs (here the demo "producer" simply hands us bf16 tensors).
    prep_bf16 = prepare_params(params, OBS, ACT, matmul_dtype=jnp.bfloat16)
    out_bf = stochastic_model_forward(obs.astype(jnp.bfloat16),
                                      action.astype(jnp.bfloat16),
                                      prep_bf16, out_dtype=jnp.bfloat16)
    jax.block_until_ready(out_bf)
    assert jnp.allclose(out_bf["loc"].astype(jnp.float32), ref["loc"],
                        atol=6e-2, rtol=6e-2)
    assert jnp.allclose(out_bf["scale"].astype(jnp.float32), ref["scale"],
                        atol=6e-2, rtol=6e-2)

    # TODO(synk): sample/rsample/log_prob/cdf/icdf/entropy/perplexity/reproduce/
    # deterministic belong to the dist module (ptd.ConditionalDistribution), not
    # forward(); not kernelized here.
    print("KERNEL_OK")
</pallas_src>

<mosaic_0001>
module attributes {stable_mosaic.version = 11 : i64} {
  func.func @params_kernel(%arg0: i32, %arg1: memref<8x16xf32, #tpu.memory_space<vmem>>, %arg2: memref<8x8xf32, #tpu.memory_space<vmem>>, %arg3: memref<16x128xf32, #tpu.memory_space<vmem>>, %arg4: memref<8x128xf32, #tpu.memory_space<vmem>>, %arg5: memref<1x128xf32, #tpu.memory_space<vmem>>, %arg6: memref<128x128xf32, #tpu.memory_space<vmem>>, %arg7: memref<1x128xf32, #tpu.memory_space<vmem>>, %arg8: memref<128x16xf32, #tpu.memory_space<vmem>>, %arg9: memref<1x16xf32, #tpu.memory_space<vmem>>, %arg10: memref<128x16xf32, #tpu.memory_space<vmem>>, %arg11: memref<1x16xf32, #tpu.memory_space<vmem>>, %arg12: memref<8x16xf32, #tpu.memory_space<vmem>>, %arg13: memref<8x16xf32, #tpu.memory_space<vmem>>) attributes {dimension_semantics = [#tpu.dimension_semantics<parallel>], iteration_bounds = array<i64: 1>, scalar_prefetch = 0 : i64, scratch_operands = 0 : i64, tpu.core_type = #tpu.core_type<tc>, window_params = [{transform_indices = @transform_0, window_bounds = array<i64: 8, 16>}, {transform_indices = @transform_1, window_bounds = array<i64: 8, 8>}, {pipeline_mode = #tpu.pipeline_mode<synchronous>, transform_indices = @transform_2, window_bounds = array<i64: 16, 128>}, {pipeline_mode = #tpu.pipeline_mode<synchronous>, transform_indices = @transform_3, window_bounds = array<i64: 8, 128>}, {pipeline_mode = #tpu.pipeline_mode<synchronous>, transform_indices = @transform_4, window_bounds = array<i64: 1, 128>}, {pipeline_mode = #tpu.pipeline_mode<synchronous>, transform_indices = @transform_5, window_bounds = array<i64: 128, 128>}, {pipeline_mode = #tpu.pipeline_mode<synchronous>, transform_indices = @transform_6, window_bounds = array<i64: 1, 128>}, {pipeline_mode = #tpu.pipeline_mode<synchronous>, transform_indices = @transform_7, window_bounds = array<i64: 128, 16>}, {pipeline_mode = #tpu.pipeline_mode<synchronous>, transform_indices = @transform_8, window_bounds = array<i64: 1, 16>}, {pipeline_mode = #tpu.pipeline_mode<synchronous>, transform_indices = @transform_9, window_bounds = array<i64: 128, 16>}, {pipeline_mode = #tpu.pipeline_mode<synchronous>, transform_indices = @transform_10, window_bounds = array<i64: 1, 16>}, {transform_indices = @transform_11, window_bounds = array<i64: 8, 16>}, {transform_indices = @transform_12, window_bounds = array<i64: 8, 16>}]} {
    %c0 = arith.constant 0 : index
    %c0_0 = arith.constant 0 : index
    %0 = vector.load %arg1[%c0, %c0_0] : memref<8x16xf32, #tpu.memory_space<vmem>>, vector<8x16xf32>
    %c0_1 = arith.constant 0 : index
    %c0_2 = arith.constant 0 : index
    %1 = vector.load %arg2[%c0_1, %c0_2] : memref<8x8xf32, #tpu.memory_space<vmem>>, vector<8x8xf32>
    %c0_3 = arith.constant 0 : index
    %c0_4 = arith.constant 0 : index
    %2 = vector.load %arg3[%c0_3, %c0_4] : memref<16x128xf32, #tpu.memory_space<vmem>>, vector<16x128xf32>
    %cst = arith.constant dense<0.000000e+00> : vector<8x128xf32>
    %3 = tpu.matmul %0, %2, %cst {dimension_numbers = #tpu.dot_dimension_numbers<[1], [0], [0], [1], [0, 0, 1, 1], [], []>} : vector<8x16xf32>, vector<16x128xf32>, vector<8x128xf32> -> vector<8x128xf32>
    %c0_5 = arith.constant 0 : index
    %c0_6 = arith.constant 0 : index
    %4 = vector.load %arg4[%c0_5, %c0_6] : memref<8x128xf32, #tpu.memory_space<vmem>>, vector<8x128xf32>
    %cst_7 = arith.constant dense<0.000000e+00> : vector<8x128xf32>
    %5 = tpu.matmul %1, %4, %cst_7 {dimension_numbers = #tpu.dot_dimension_numbers<[1], [0], [0], [1], [0, 0, 1, 1], [], []>} : vector<8x8xf32>, vector<8x128xf32>, vector<8x128xf32> -> vector<8x128xf32>
    %6 = arith.addf %3, %5 : vector<8x128xf32>
    %c0_8 = arith.constant 0 : index
    %c0_9 = arith.constant 0 : index
    %7 = vector.load %arg5[%c0_8, %c0_9] : memref<1x128xf32, #tpu.memory_space<vmem>>, vector<1x128xf32>
    %8 = vector.broadcast %7 : vector<1x128xf32> to vector<8x128xf32>
    %9 = arith.addf %6, %8 : vector<8x128xf32>
    %cst_10 = arith.constant 0.000000e+00 : f32
    %10 = vector.broadcast %cst_10 : f32 to vector<8x128xf32>
    %11 = arith.maximumf %9, %10 : vector<8x128xf32>
    %c0_11 = arith.constant 0 : index
    %c0_12 = arith.constant 0 : index
    %12 = vector.load %arg6[%c0_11, %c0_12] : memref<128x128xf32, #tpu.memory_space<vmem>>, vector<128x128xf32>
    %cst_13 = arith.constant dense<0.000000e+00> : vector<8x128xf32>
    %13 = tpu.matmul %11, %12, %cst_13 {dimension_numbers = #tpu.dot_dimension_numbers<[1], [0], [0], [1], [0, 0, 1, 1], [], []>} : vector<8x128xf32>, vector<128x128xf32>, vector<8x128xf32> -> vector<8x128xf32>
    %c0_14 = arith.constant 0 : index
    %c0_15 = arith.constant 0 : index
    %14 = vector.load %arg7[%c0_14, %c0_15] : memref<1x128xf32, #tpu.memory_space<vmem>>, vector<1x128xf32>
    %15 = vector.broadcast %14 : vector<1x128xf32> to vector<8x128xf32>
    %16 = arith.addf %13, %15 : vector<8x128xf32>
    %cst_16 = arith.constant 0.000000e+00 : f32
    %17 = vector.broadcast %cst_16 : f32 to vector<8x128xf32>
    %18 = arith.maximumf %16, %17 : vector<8x128xf32>
    %c0_17 = arith.constant 0 : index
    %c0_18 = arith.constant 0 : index
    %19 = vector.load %arg8[%c0_17, %c0_18] : memref<128x16xf32, #tpu.memory_space<vmem>>, vector<128x16xf32>
    %cst_19 = arith.constant dense<0.000000e+00> : vector<8x16xf32>
    %20 = tpu.matmul %18, %19, %cst_19 {dimension_numbers = #tpu.dot_dimension_numbers<[1], [0], [0], [1], [0, 0, 1, 1], [], []>} : vector<8x128xf32>, vector<128x16xf32>, vector<8x16xf32> -> vector<8x16xf32>
    %c0_20 = arith.constant 0 : index
    %c0_21 = arith.constant 0 : index
    %21 = vector.load %arg9[%c0_20, %c0_21] : memref<1x16xf32, #tpu.memory_space<vmem>>, vector<1x16xf32>
    %22 = vector.broadcast %21 : vector<1x16xf32> to vector<8x16xf32>
    %23 = arith.addf %20, %22 : vector<8x16xf32>
    %c0_22 = arith.constant 0 : index
    %c0_23 = arith.constant 0 : index
    %24 = vector.load %arg10[%c0_22, %c0_23] : memref<128x16xf32, #tpu.memory_space<vmem>>, vector<128x16xf32>
    %cst_24 = arith.constant dense<0.000000e+00> : vector<8x16xf32>
    %25 = tpu.matmul %18, %24, %cst_24 {dimension_numbers = #tpu.dot_dimension_numbers<[1], [0], [0], [1], [0, 0, 1, 1], [], []>} : vector<8x128xf32>, vector<128x16xf32>, vector<8x16xf32> -> vector<8x16xf32>
    %c0_25 = arith.constant 0 : index
    %c0_26 = arith.constant 0 : index
    %26 = vector.load %arg11[%c0_25, %c0_26] : memref<1x16xf32, #tpu.memory_space<vmem>>, vector<1x16xf32>
    %27 = vector.broadcast %26 : vector<1x16xf32> to vector<8x16xf32>
    %28 = arith.addf %25, %27 : vector<8x16xf32>
    %cst_27 = arith.constant 0.000000e+00 : f32
    %29 = vector.broadcast %cst_27 : f32 to vector<8x16xf32>
    %30 = arith.maximumf %28, %29 : vector<8x16xf32>
    %31 = math.absf %28 : vector<8x16xf32>
    %cst_28 = arith.constant 0.000000e+00 : f32
    %32 = vector.broadcast %cst_28 : f32 to vector<8x16xf32>
    %33 = arith.subf %32, %31 : vector<8x16xf32>
    %34 = math.exp %33 : vector<8x16xf32>
    %35 = math.log1p %34 : vector<8x16xf32>
    %36 = arith.addf %30, %35 : vector<8x16xf32>
    %c0_29 = arith.constant 0 : index
    %c0_30 = arith.constant 0 : index
    %37 = vector.load %arg12[%c0_29, %c0_30] : memref<8x16xf32, #tpu.memory_space<vmem>>, vector<8x16xf32>
    tpu.vector_store %arg12[%c0_29, %c0_30], %23 {strides = array<i32>} : memref<8x16xf32, #tpu.memory_space<vmem>>, vector<8x16xf32>,
    %c0_31 = arith.constant 0 : index
    %c0_32 = arith.constant 0 : index
    %38 = vector.load %arg13[%c0_31, %c0_32] : memref<8x16xf32, #tpu.memory_space<vmem>>, vector<8x16xf32>
    tpu.vector_store %arg13[%c0_31, %c0_32], %36 {strides = array<i32>} : memref<8x16xf32, #tpu.memory_space<vmem>>, vector<8x16xf32>,
    return
  }
  func.func @transform_0(%arg0: i32) -> (i32, i32) {
    %c0_i32 = arith.constant 0 : i32
    %c0_i32_0 = arith.constant 0 : i32
    return %arg0, %c0_i32 : i32, i32
  }
  func.func @transform_1(%arg0: i32) -> (i32, i32) {
    %c0_i32 = arith.constant 0 : i32
    %c0_i32_0 = arith.constant 0 : i32
    return %arg0, %c0_i32 : i32, i32
  }
  func.func @transform_2(%arg0: i32) -> (i32, i32) {
    %c0_i32 = arith.constant 0 : i32
    %c0_i32_0 = arith.constant 0 : i32
    %c0_i32_1 = arith.constant 0 : i32
    return %c0_i32, %c0_i32_0 : i32, i32
  }
  func.func @transform_3(%arg0: i32) -> (i32, i32) {
    %c0_i32 = arith.constant 0 : i32
    %c0_i32_0 = arith.constant 0 : i32
    %c0_i32_1 = arith.constant 0 : i32
    return %c0_i32, %c0_i32_0 : i32, i32
  }
  func.func @transform_4(%arg0: i32) -> (i32, i32) {
    %c0_i32 = arith.constant 0 : i32
    %c0_i32_0 = arith.constant 0 : i32
    %c0_i32_1 = arith.constant 0 : i32
    return %c0_i32, %c0_i32_0 : i32, i32
  }
  func.func @transform_5(%arg0: i32) -> (i32, i32) {
    %c0_i32 = arith.constant 0 : i32
    %c0_i32_0 = arith.constant 0 : i32
    %c0_i32_1 = arith.constant 0 : i32
    return %c0_i32, %c0_i32_0 : i32, i32
  }
  func.func @transform_6(%arg0: i32) -> (i32, i32) {
    %c0_i32 = arith.constant 0 : i32
    %c0_i32_0 = arith.constant 0 : i32
    %c0_i32_1 = arith.constant 0 : i32
    return %c0_i32, %c0_i32_0 : i32, i32
  }
  func.func @transform_7(%arg0: i32) -> (i32, i32) {
    %c0_i32 = arith.constant 0 : i32
    %c0_i32_0 = arith.constant 0 : i32
    %c0_i32_1 = arith.constant 0 : i32
    return %c0_i32, %c0_i32_0 : i32, i32
  }
  func.func @transform_8(%arg0: i32) -> (i32, i32) {
    %c0_i32 = arith.constant 0 : i32
    %c0_i32_0 = arith.constant 0 : i32
    %c0_i32_1 = arith.constant 0 : i32
    return %c0_i32, %c0_i32_0 : i32, i32
  }
  func.func @transform_9(%arg0: i32) -> (i32, i32) {
    %c0_i32 = arith.constant 0 : i32
    %c0_i32_0 = arith.constant 0 : i32
    %c0_i32_1 = arith.constant 0 : i32
    return %c0_i32, %c0_i32_0 : i32, i32
  }
  func.func @transform_10(%arg0: i32) -> (i32, i32) {
    %c0_i32 = arith.constant 0 : i32
    %c0_i32_0 = arith.constant 0 : i32
    %c0_i32_1 = arith.constant 0 : i32
    return %c0_i32, %c0_i32_0 : i32, i32
  }
  func.func @transform_11(%arg0: i32) -> (i32, i32) {
    %c0_i32 = arith.constant 0 : i32
    %c0_i32_0 = arith.constant 0 : i32
    return %arg0, %c0_i32 : i32, i32
  }
  func.func @transform_12(%arg0: i32) -> (i32, i32) {
    %c0_i32 = arith.constant 0 : i32
    %c0_i32_0 = arith.constant 0 : i32
    return %arg0, %c0_i32 : i32, i32
  }
}

</mosaic_0001>

<bundles_post_ra>
// kernel: stochastic_model_forward.1
= control target key start
LH: loop header
LB: loop body
LE: loop exit
PB: predicated region body
PF: predicated region fallthrough
CT: control target
= control target key end

     0   :  { %18 = vsyncpa [#allocation3], 0  ;;  %vm47_vm0 = vcmask 64512   ;;  %s582_s0 = inlined_call_operand.vmem [shape: f32[8,16], index: 0, kind: input, shape index: {}]   ;;  %s583_s1 = inlined_call_operand.vmem [shape: f32[8,8], index: 1, kind: input, shape index: {}]   ;;  %s584_s2 = inlined_call_operand.vmem [shape: f32[16,128], index: 2, kind: input, shape index: {}]   ;;  %s585_s3 = inlined_call_operand.vmem [shape: f32[8,128], index: 3, kind: input, shape index: {}]   ;;  %s586_s4 = inlined_call_operand.vmem [shape: f32[1,128], index: 4, kind: input, shape index: {}]   ;;  %s587_s5 = inlined_call_operand.vmem [shape: f32[128,128], index: 5, kind: input, shape index: {}]   ;;  %s588_s6 = inlined_call_operand.vmem [shape: f32[1,128], index: 6, kind: input, shape index: {}]   ;;  %s589_s7 = inlined_call_operand.vmem [shape: f32[128,16], index: 7, kind: input, shape index: {}]   ;;  %s590_s8 = inlined_call_operand.vmem [shape: f32[1,16], index: 8, kind: input, shape index: {}]   ;;  %s591_s9 = inlined_call_operand.vmem [shape: f32[128,16], index: 9, kind: input, shape index: {}]   ;;  %s592_s10 = inlined_call_operand.vmem [shape: f32[1,16], index: 10, kind: input, shape index: {}]   ;;  %s593_s11 = inlined_call_operand.hbm [shape: f32[8,16], index: 11, kind: output, shape index: {0}]   ;;  %s594_s12 = inlined_call_operand.hbm [shape: f32[8,16], index: 12, kind: output, shape index: {1}]  }
   0x1   :  { %v46_v0 = vld [vmem:[%s585_s3] sm:$0xff]  ;;  %v45_v2 = vld [vmem:[%s584_s2 + $0x8] sm:$0xff]  ;;  %v116_v3 = vld [vmem:[%s587_s5 + $0x78] sm:$0xff] }
   0x2   :  { %v43_v1 = vld [vmem:[%s583_s1] sm:$0xff]  ;;  %66 = vmatpush.msra.mxu1 %v46_v0  ;;  %121 = vmatpush.msra.mxu2 %v116_v3  ;;  %v115_v5 = vld [vmem:[%s587_s5 + $0x70] sm:$0xff]  ;;  %v114_v6 = vld [vmem:[%s587_s5 + $0x68] sm:$0xff] }
   0x3   :  { %271 = vmatmul.msk.f32.vlgmr.msra.gmra.mxu1 %vm47_vm0, %v43_v1  ;;  %v44_v4 = vld [vmem:[%s584_s2] sm:$0xff] }
   0x4   :  { %89 = vmatpush.msrb.mxu1 %v45_v2  ;;  %122 = vmatpush.msra.mxu2 %v115_v5  ;;  %v113_v7 = vld [vmem:[%s587_s5 + $0x60] sm:$0xff] }
   0x6   :  { %90 = vmatpush.msrb.mxu1 %v44_v4 }
   0x7   :  { %19 = vsyncpa [#allocation5], 0  ;;  %123 = vmatpush.msra.mxu2 %v114_v6  ;;  %v42_v8 = vld [vmem:[%s582_s0] sm:$0xff]  ;;  %vm71_vm1 = vcmask 130048   ;;  %v112_v9 = vld [vmem:[%s587_s5 + $0x58] sm:$0xff]  ;;  %s335_s20 = smov [#allocation2]  }
   0x8   :  { %v111_v10 = vld [vmem:[%s587_s5 + $0x50] sm:$0xff]  ;;  %v110_v11 = vld [vmem:[%s587_s5 + $0x48] sm:$0xff]  ;;  %v109_v12 = vld [vmem:[%s587_s5 + $0x40] sm:$0xff]  ;;  %s244_s21 = sshll.u32 %s335_s20, 4  ;;  %s246_s23 = sshll.u32 %s593_s11, 4  ;;  %s245_s21 = int_to_ptr.vmem [resolvable:$true] %s244_s21  ;;  %s247_s23 = int_to_ptr.hbm [resolvable:$true] %s246_s23 }
   0x9   :  { %124 = vmatpush.msra.mxu2 %v113_v7  ;;  %v108_v13 = vld [vmem:[%s587_s5 + $0x38] sm:$0xff]  ;;  %v107_v14 = vld [vmem:[%s587_s5 + $0x30] sm:$0xff]  ;;  %v106_v15 = vld [vmem:[%s587_s5 + $0x28] sm:$0xff]  ;;  %s257_s0 = sshll.u32 %s594_s12, 4  ;;  %s258_s0 = int_to_ptr.hbm [resolvable:$true] %s257_s0 }
   0xa   :  { %v105_v16 = vld [vmem:[%s587_s5 + $0x20] sm:$0xff]  ;;  %v104_v17 = vld [vmem:[%s587_s5 + $0x18] sm:$0xff]  ;;  %v103_v18 = vld [vmem:[%s587_s5 + $0x10] sm:$0xff] }
   0xb   :  { %272 = vmatmul.msk.f32.vlgmr.msrb.gmra.mxu1 %vm71_vm1, %v42_v8  ;;  %125 = vmatpush.msra.mxu2 %v112_v9  ;;  %v102_v19 = vld [vmem:[%s587_s5 + $0x8] sm:$0xff]  ;;  %v101_v20 = vld [vmem:[%s587_s5] sm:$0xff]  ;;  %v157_v21 = vld [vmem:[%s589_s7 + $0x78] sm:$0xff] }
   0xc   :  { %v197_v22 = vld [vmem:[%s591_s9 + $0x78] sm:$0xff]  ;;  %v156_v23 = vld [vmem:[%s589_s7 + $0x70] sm:$0xff]  ;;  %162 = vmatpush.msra.mxu3 %v157_v21  ;;  %v155_v25 = vld [vmem:[%s589_s7 + $0x68] sm:$0xff] }
   0xd   :  { %126 = vmatpush.msra.mxu2 %v111_v10  ;;  %202 = vmatpush.msra.mxu0 %v197_v22  ;;  %v196_v24 = vld [vmem:[%s591_s9 + $0x70] sm:$0xff]  ;;  %v195_v26 = vld [vmem:[%s591_s9 + $0x68] sm:$0xff]  ;;  %v154_v27 = vld [vmem:[%s589_s7 + $0x60] sm:$0xff] }
   0xe   :  { %163 = vmatpush.msra.mxu3 %v156_v23  ;;  %v194_v28 = vld [vmem:[%s591_s9 + $0x60] sm:$0xff]  ;;  %v153_v29 = vld [vmem:[%s589_s7 + $0x58] sm:$0xff]  ;;  %v152_v31 = vld [vmem:[%s589_s7 + $0x50] sm:$0xff] }
   0xf   :  { %127 = vmatpush.msra.mxu2 %v110_v11  ;;  %203 = vmatpush.msra.mxu0 %v196_v24  ;;  %v193_v30 = vld [vmem:[%s591_s9 + $0x58] sm:$0xff]  ;;  %v192_v32 = vld [vmem:[%s591_s9 + $0x50] sm:$0xff]  ;;  %v151_v33 = vld [vmem:[%s589_s7 + $0x48] sm:$0xff] }
  0x10   :  { %164 = vmatpush.msra.mxu3 %v155_v25  ;;  %v191_v34 = vld [vmem:[%s591_s9 + $0x48] sm:$0xff]  ;;  %v150_v35 = vld [vmem:[%s589_s7 + $0x40] sm:$0xff]  ;;  %v149_v37 = vld [vmem:[%s589_s7 + $0x38] sm:$0xff] }
  0x11   :  { %128 = vmatpush.msra.mxu2 %v109_v12  ;;  %204 = vmatpush.msra.mxu0 %v195_v26  ;;  %v190_v36 = vld [vmem:[%s591_s9 + $0x40] sm:$0xff]  ;;  %v189_v38 = vld [vmem:[%s591_s9 + $0x38] sm:$0xff]  ;;  %v148_v39 = vld [vmem:[%s589_s7 + $0x30] sm:$0xff] }
  0x12   :  { %165 = vmatpush.msra.mxu3 %v154_v27  ;;  %v188_v40 = vld [vmem:[%s591_s9 + $0x30] sm:$0xff]  ;;  %v147_v42 = vld [vmem:[%s589_s7 + $0x28] sm:$0xff]  ;;  %v146_v44 = vld [vmem:[%s589_s7 + $0x20] sm:$0xff] }
  0x13   :  { %129 = vmatpush.msra.mxu2 %v108_v13  ;;  %205 = vmatpush.msra.mxu0 %v194_v28  ;;  %v187_v43 = vld [vmem:[%s591_s9 + $0x28] sm:$0xff]  ;;  %v186_v45 = vld [vmem:[%s591_s9 + $0x20] sm:$0xff]  ;;  %v145_v46 = vld [vmem:[%s589_s7 + $0x18] sm:$0xff] }
  0x14   :  { %166 = vmatpush.msra.mxu3 %v153_v29  ;;  %v185_v47 = vld [vmem:[%s591_s9 + $0x18] sm:$0xff]  ;;  %v275_v48 = vld [vmem:[%s586_s4] ss:$0 sm:$0xff]  ;;  %v144_v53 = vld [vmem:[%s589_s7 + $0x10] sm:$0xff] }
  0x15   :  { %130 = vmatpush.msra.mxu2 %v107_v14  ;;  %206 = vmatpush.msra.mxu0 %v193_v30  ;;  %v184_v54 = vld [vmem:[%s591_s9 + $0x10] sm:$0xff]  ;;  %v143_v55 = vld [vmem:[%s589_s7 + $0x8] sm:$0xff]  ;;  %v142_v57 = vld [vmem:[%s589_s7] sm:$0xff] }
  0x16   :  { %167 = vmatpush.msra.mxu3 %v152_v31  ;;  %v183_v56 = vld [vmem:[%s591_s9 + $0x8] sm:$0xff]  ;;  %v182_v58 = vld [vmem:[%s591_s9] sm:$0xff] }
  0x17   :  { %131 = vmatpush.msra.mxu2 %v106_v15  ;;  %207 = vmatpush.msra.mxu0 %v192_v32  ;;  %v276_v59 = vld [vmem:[%s588_s6] ss:$0 sm:$0xff] }
  0x18   :  { %168 = vmatpush.msra.mxu3 %v151_v33  ;;  %v277_v63 = vld [vmem:[%s592_s10] ss:$0 sm:$0xff] }
  0x19   :  { %132 = vmatpush.msra.mxu2 %v105_v16  ;;  %208 = vmatpush.msra.mxu0 %v191_v34  ;;  %v278_v3 = vld [vmem:[%s590_s8] ss:$0 sm:$0xff]  ;;  %s336_s8 = smov [#allocation4]  }
  0x1a   :  { %169 = vmatpush.msra.mxu3 %v150_v35  ;;  %s255_s10 = sshll.u32 %s336_s8, 4  ;;  %s256_s10 = int_to_ptr.vmem [resolvable:$true] %s255_s10 }
  0x1b   :  { %133 = vmatpush.msra.mxu2 %v104_v17  ;;  %209 = vmatpush.msra.mxu0 %v190_v36 }
  0x1c   :  { %170 = vmatpush.msra.mxu3 %v149_v37 }
  0x1d   :  { %134 = vmatpush.msra.mxu2 %v103_v18  ;;  %210 = vmatpush.msra.mxu0 %v189_v38 }
  0x1e   :  { %171 = vmatpush.msra.mxu3 %v148_v39 }
  0x1f   :  { %135 = vmatpush.msra.mxu2 %v102_v19  ;;  %211 = vmatpush.msra.mxu0 %v188_v40 }
  0x20   :  { %172 = vmatpush.msra.mxu3 %v147_v42 }
  0x21   :  { %136 = vmatpush.msra.mxu2 %v101_v20  ;;  %212 = vmatpush.msra.mxu0 %v187_v43 }
  0x22   :  { %173 = vmatpush.msra.mxu3 %v146_v44 }
  0x23   :  { %213 = vmatpush.msra.mxu0 %v186_v45 }
  0x24   :  { %174 = vmatpush.msra.mxu3 %v145_v46 }
  0x25   :  { %214 = vmatpush.msra.mxu0 %v185_v47 }
  0x26   :  { %175 = vmatpush.msra.mxu3 %v144_v53 }
  0x27   :  { %215 = vmatpush.msra.mxu0 %v184_v54 }
  0x28   :  { %176 = vmatpush.msra.mxu3 %v143_v55 }
  0x29   :  { %216 = vmatpush.msra.mxu0 %v183_v56 }
  0x2a   :  { %177 = vmatpush.msra.mxu3 %v142_v57 }
  0x2b   :  { %217 = vmatpush.msra.mxu0 %v182_v58 }
  0x80   :  { %v68_v41 = vpop.f32.mrf.mxu1 }
  0x88   :  { %v92_v49 = vpop.f32.mrf.mxu1 }
  0x89   :  { %v93_v50 = vadd.f32 %v92_v49, %v68_v41 }
  0x8b   :  { %v99_v51 = vadd.f32 %v275_v48, %v93_v50 }
  0x8d   :  { %v100_v52 = vmax.f32 %v99_v51, 0.0 }
  0x8f   :  { %137 = vmatmul.f32.vlgmr.msra.gmra.mxu2 %v100_v52 }
 0x112   :  { %v138_v60 = vpop.f32.mrf.mxu2 }
 0x113   :  { %v139_v61 = vadd.f32 %v276_v59, %v138_v60 }
 0x115   :  { %v141_v62 = vmax.f32 %v139_v61, 0.0 }
 0x117   :  { %178 = vmatmul.f32.vlgmr.msra.gmra.mxu3 %v141_v62  ;;  %218 = vmatmul.f32.vlgmr.msra.gmra.mxu0 %v141_v62 }
 0x194   :  { %v219_v0 = vpop.f32.mrf.mxu0 }
 0x195   :  { %v220_v1 = vadd.f32 %v277_v63, %v219_v0 }
 0x197   :  { %v223_v2 = vand.u32 2147483647, %v220_v1  ;;  %v222_v16 = vmax.f32 %v220_v1, 0.0 }
 0x199   :  { %v224_v4 = vsub.f32 0.0, %v223_v2 }
 0x19a   :  { %v179_v5 = vpop.f32.mrf.mxu3 }
 0x19b   :  { %v225_v6 = vmul.f32 1.442695, %v224_v4  ;;  %v180_v7 = vadd.f32 %v278_v3, %v179_v5 }
 0x19d   :  { %279 = vpow2.f32 %v225_v6  ;;  %237 = vst.msk [vmem:[#allocation2] sm:$0xff] %vm71_vm1, %v180_v7 }
 0x19e   :  { %249 = dma.vmem_to_hbm [thread:$0]  %s245_s21, 128, %s247_s23, [#allocation3]  }
 0x1a3   :  { %v280_v8 = vpop.eup %279 }
 0x1a4   :  { %v227_v9 = vadd.f32 1.0, %v280_v8  ;;  %v230_v10 = vmul.f32 -0.5, %v280_v8  ;;  %v233_v12 = vand.u32 2147483647, %v280_v8 }
 0x1a6   :  { %281 = vlog2.f32 %v227_v9  ;;  %v231_v11 = vadd.f32 1.0, %v230_v10  ;;  %vm234_vm2 = vcmp.lt.f32.partialorder %v233_v12, 0.0004427343 }
 0x1a8   :  { %v232_v15 = vmul.f32 %v280_v8, %v231_v11 }
 0x1ac   :  { %v282_v13 = vpop.eup %281 }
 0x1ad   :  { %v229_v14 = vmul.f32 0.6931472, %v282_v13 }
 0x1af   :  { %v235_v17 = vsel %vm234_vm2, %v232_v15, %v229_v14 }
 0x1b0   :  { %v236_v18 = vadd.f32 %v235_v17, %v222_v16 }
 0x1b2   :  { %238 = vst.msk [vmem:[#allocation4] sm:$0xff] %vm71_vm1, %v236_v18 }
 0x1b3   :  { %260 = dma.vmem_to_hbm [thread:$0]  %s256_s10, 128, %s258_s0, [#allocation5]  }
 0x1b4   :  { %331 = dma.done.wait [#allocation3], 128  }
 0x1b5   :  { %332 = vsyncadd [#allocation3], 4294967168 }
 0x1b6   :  { %333 = dma.done.wait [#allocation5], 128  }
 0x1b7   :  { %334 = vsyncadd [#allocation5], 4294967168 }
 0x1b8   :  { %269 = vsyncpa [#allocation3], 1 }
 0x1b9   :  { %270 = vsyncpa [#allocation5], 1 }

</bundles_post_ra>
